<compile_context>
chip_gen: v6e
topology: v6e:2x2x1
jax: 0.10.0
libtpu: 0.0.40
codegen_flags: <defaults>
</compile_context>

<pallas_src>
import math
import jax
import jax.numpy as jnp
from jax.experimental import pallas as pl
from jax.experimental.pallas import tpu as pltpu

_BN_EPS = 1e-5


def _gelu_tanh(x):
    # tanh-approximate GELU (EUP tanh). Deviation from exact erf GELU <~1e-3.
    return jax.nn.gelu(x, approximate=True)


def _bn_train_fold(x, gamma, beta, inv_b):
    # Training-mode BatchNorm1d over the batch axis, one stats sweep
    # (var = E[x^2] - mu^2, clamped against f32 cancellation), folded into a
    # per-feature scale/shift so applying it costs 2 VALU ops per element.
    s1 = jnp.sum(x, axis=0, keepdims=True)
    s2 = jnp.sum(x * x, axis=0, keepdims=True)
    mu = s1 * inv_b
    var = jnp.maximum(s2 * inv_b - mu * mu, 0.0)
    scale = jax.lax.rsqrt(var + _BN_EPS) * gamma
    shift = beta - mu * scale
    return x * scale + shift


def _inference_mlp_kernel(x_ref, w1_ref, gb1_ref, w2_ref, gb2_ref, o_ref):
    inv_b = 1.0 / x_ref.shape[0]        # static batch size

    # layer 1: Linear(in_dim, H) + BN(H) + GELU
    # (Linear bias dropped: train-mode BN subtracts the batch mean, so a
    #  per-feature pre-BN constant is an exact no-op.)
    h = jnp.dot(x_ref[...], w1_ref[...], preferred_element_type=jnp.float32)
    h = _gelu_tanh(_bn_train_fold(h, gb1_ref[0:1, :], gb1_ref[1:2, :], inv_b))

    # layer 2: Linear(H, out_dim) + BN(out_dim) + GELU (final_norm/final_act=True)
    y = jnp.dot(h.astype(jnp.bfloat16), w2_ref[...],
                preferred_element_type=jnp.float32)
    y = _gelu_tanh(_bn_train_fold(y, gb2_ref[0:1, :], gb2_ref[1:2, :], inv_b))

    # out_dim=16 < 128 lanes -> masked vst; negligible at this output size.
    o_ref[...] = y.astype(o_ref.dtype)


def _vmem_capacity_bytes():
    try:
        cap = getattr(pltpu.get_tpu_info(), "vmem_capacity_bytes", None)
        if cap:
            return int(cap)
    except Exception:
        pass
    return 64 * 1024 * 1024     # conservative fallback (v7x per-TC VMEM)


def inference_mlp_forward(x, params):
    """x: (B, in_dim) float32 (or bfloat16). params: dict from init_params."""
    B, in_dim = x.shape
    H = params["w1"].shape[1]
    out_dim = params["w2"].shape[1]

    # bf16 activations into the MXU (halves the x DMA, native MXU cadence);
    # all BN / GELU math stays f32 inside the kernel.
    x_bf16 = x.astype(jnp.bfloat16)

    args = (x_bf16, params["w1"], params["gb1"], params["w2"], params["gb2"])

    in_bytes = sum(int(a.size) * a.dtype.itemsize for a in args)
    out_bytes = B * out_dim * 4
    # Single-block design: inputs + output + f32 (B,H) intermediates must all
    # be VMEM-resident at once. Budget derived per-generation.
    vmem_needed = in_bytes + out_bytes + 3 * B * H * 4
    vmem_budget = (_vmem_capacity_bytes() * 3) // 4     # headroom for compiler scratch
    if vmem_needed > vmem_budget:
        # TODO(synk): large-B path -- add a batch grid axis marked "parallel"
        # (uses both v7x TensorCores), keep w1/w2 index_maps constant along it
        # so the weights stay VMEM-resident, and do BN as two-pass per-feature
        # partial sums across batch tiles.
        raise ValueError(
            f"inference_mlp_forward: needs ~{vmem_needed} B of VMEM, exceeds "
            f"budget {vmem_budget} B; tile the batch dimension instead.")

    flops = 2 * B * (in_dim * H + H * out_dim)
    transcendentals = B * (H + out_dim)        # one tanh per activation
    cost = pl.CostEstimate(flops=flops, transcendentals=transcendentals,
                           bytes_accessed=in_bytes + out_bytes)

    # No grid: kernel runs once, every operand is a whole-array VMEM block.
    vmem_spec = pl.BlockSpec(memory_space=pltpu.MemorySpace.VMEM)

    # TODO(synk): serving-loop path -- keep w1/w2 VMEM-resident across calls
    # (cross-call semaphore/VMEM-output future) to hide weight DMA latency.
    return pl.pallas_call(
        _inference_mlp_kernel,
        out_shape=jax.ShapeDtypeStruct((B, out_dim), jnp.float32),
        in_specs=[vmem_spec] * len(args),
        out_specs=vmem_spec,
        cost_estimate=cost,
        compiler_params=pltpu.CompilerParams(vmem_limit_bytes=vmem_budget),
    )(*args)


def init_params(key, in_dim, out_dim, hidden=1024):
    """PyTorch-default init: Linear W,b ~ U(+-1/sqrt(fan_in)); BN gamma=1,beta=0.
    Weights stored bf16 for the MXU; BN affine packed as (2,F) f32 [gamma;beta].
    b1/b2 kept only for the exact PyTorch-semantics reference -- train-mode BN
    cancels them exactly, so the kernel never reads them."""
    k1, k2, k3, k4 = jax.random.split(key, 4)
    lim1 = 1.0 / math.sqrt(in_dim)
    lim2 = 1.0 / math.sqrt(hidden)
    gb1 = jnp.concatenate([jnp.ones((1, hidden), jnp.float32),
                           jnp.zeros((1, hidden), jnp.float32)], axis=0)
    gb2 = jnp.concatenate([jnp.ones((1, out_dim), jnp.float32),
                           jnp.zeros((1, out_dim), jnp.float32)], axis=0)
    return {
        "w1": jax.random.uniform(k1, (in_dim, hidden), jnp.float32,
                                 -lim1, lim1).astype(jnp.bfloat16),
        "b1": jax.random.uniform(k2, (1, hidden), jnp.float32, -lim1, lim1),
        "gb1": gb1,
        "w2": jax.random.uniform(k3, (hidden, out_dim), jnp.float32,
                                 -lim2, lim2).astype(jnp.bfloat16),
        "b2": jax.random.uniform(k4, (1, out_dim), jnp.float32, -lim2, lim2),
        "gb2": gb2,
    }


# ----------------------------- references ----------------------------------

def _bn_ref(x, gamma, beta):
    mu = jnp.mean(x, axis=0, keepdims=True)
    var = jnp.mean((x - mu) * (x - mu), axis=0, keepdims=True)
    return (x - mu) * jax.lax.rsqrt(var + _BN_EPS) * gamma + beta


def _gelu_erf(x):
    return 0.5 * x * (1.0 + jax.lax.erf(x * (1.0 / math.sqrt(2.0))))


def _reference_exact(x, p):
    # PyTorch-semantics reference: f32 matmuls (weights upcast), Linear bias
    # included, two-pass batch-stat BN, exact-erf GELU.
    h = x @ p["w1"].astype(jnp.float32) + p["b1"]
    h = _gelu_erf(_bn_ref(h, p["gb1"][0:1], p["gb1"][1:2]))
    y = h @ p["w2"].astype(jnp.float32) + p["b2"]
    return _gelu_erf(_bn_ref(y, p["gb2"][0:1], p["gb2"][1:2]))


def _reference_matched(x, p):
    # Same numeric choices as the kernel (bf16 matmul operands, bias dropped,
    # one-pass folded BN, tanh GELU) -- tight validation of the kernel itself.
    inv_b = 1.0 / x.shape[0]
    h = jnp.dot(x.astype(jnp.bfloat16), p["w1"],
                preferred_element_type=jnp.float32)
    h = _gelu_tanh(_bn_train_fold(h, p["gb1"][0:1], p["gb1"][1:2], inv_b))
    y = jnp.dot(h.astype(jnp.bfloat16), p["w2"],
                preferred_element_type=jnp.float32)
    return _gelu_tanh(_bn_train_fold(y, p["gb2"][0:1], p["gb2"][1:2], inv_b))


if __name__ == "__main__":
    B, in_dim, out_dim, hidden = 8, 32, 16, 1024    # hidden_dim=[1024]

    key = jax.random.PRNGKey(0)
    kx, kp = jax.random.split(key)
    x = jax.random.normal(kx, (B, in_dim), dtype=jnp.float32)
    params = init_params(kp, in_dim, out_dim, hidden)

    out = jax.block_until_ready(inference_mlp_forward(x, params))
    assert out.shape == (B, out_dim)

    # Tight check: reference with identical numeric choices as the kernel.
    ref_m = jax.block_until_ready(_reference_matched(x, params))
    assert jnp.allclose(out, ref_m, atol=5e-3, rtol=5e-3), \
        "mismatch vs matched reference"

    # Loose check: exact PyTorch semantics (f32, bias, erf GELU, two-pass BN);
    # tolerance covers bf16 matmul operands + tanh-GELU approximation.
    ref_e = jax.block_until_ready(_reference_exact(x, params))
    assert jnp.allclose(out, ref_e, atol=3e-2, rtol=3e-2), \
        "mismatch vs exact PyTorch-semantics reference"

    print("KERNEL_OK")
</pallas_src>

<mosaic_0001>
module attributes {stable_mosaic.version = 11 : i64} {
  func.func @_inference_mlp_kernel(%arg0: memref<8x32xbf16, #tpu.memory_space<vmem>>, %arg1: memref<32x1024xbf16, #tpu.memory_space<vmem>>, %arg2: memref<2x1024xf32, #tpu.memory_space<vmem>>, %arg3: memref<1024x16xbf16, #tpu.memory_space<vmem>>, %arg4: memref<2x16xf32, #tpu.memory_space<vmem>>, %arg5: memref<8x16xf32, #tpu.memory_space<vmem>>) attributes {dimension_semantics = [], scalar_prefetch = 0 : i64, scratch_operands = 0 : i64, tpu.core_type = #tpu.core_type<tc>} {
    %c0 = arith.constant 0 : index
    %c0_0 = arith.constant 0 : index
    %0 = vector.load %arg0[%c0, %c0_0] : memref<8x32xbf16, #tpu.memory_space<vmem>>, vector<8x32xbf16>
    %c0_1 = arith.constant 0 : index
    %c0_2 = arith.constant 0 : index
    %1 = vector.load %arg1[%c0_1, %c0_2] : memref<32x1024xbf16, #tpu.memory_space<vmem>>, vector<32x1024xbf16>
    %cst = arith.constant dense<0.000000e+00> : vector<8x1024xf32>
    %2 = tpu.matmul %0, %1, %cst {dimension_numbers = #tpu.dot_dimension_numbers<[1], [0], [0], [1], [0, 0, 1, 1], [], []>} : vector<8x32xbf16>, vector<32x1024xbf16>, vector<8x1024xf32> -> vector<8x1024xf32>
    %c0_3 = arith.constant 0 : index
    %c0_4 = arith.constant 0 : index
    %3 = vector.load %arg2[%c0_3, %c0_4] : memref<2x1024xf32, #tpu.memory_space<vmem>>, vector<1x1024xf32>
    %c1 = arith.constant 1 : index
    %c0_5 = arith.constant 0 : index
    %4 = vector.load %arg2[%c1, %c0_5] : memref<2x1024xf32, #tpu.memory_space<vmem>>, vector<1x1024xf32>
    %cst_6 = arith.constant dense<0.000000e+00> : vector<1024xf32>
    %5 = vector.multi_reduction <add>, %2, %cst_6 [0] : vector<8x1024xf32> to vector<1024xf32>
    %6 = vector.shape_cast %5 : vector<1024xf32> to vector<1x1024xf32>
    %7 = arith.mulf %2, %2 : vector<8x1024xf32>
    %cst_7 = arith.constant dense<0.000000e+00> : vector<1024xf32>
    %8 = vector.multi_reduction <add>, %7, %cst_7 [0] : vector<8x1024xf32> to vector<1024xf32>
    %9 = vector.shape_cast %8 : vector<1024xf32> to vector<1x1024xf32>
    %cst_8 = arith.constant 1.250000e-01 : f32
    %10 = vector.broadcast %cst_8 : f32 to vector<1x1024xf32>
    %11 = arith.mulf %6, %10 : vector<1x1024xf32>
    %cst_9 = arith.constant 1.250000e-01 : f32
    %12 = vector.broadcast %cst_9 : f32 to vector<1x1024xf32>
    %13 = arith.mulf %9, %12 : vector<1x1024xf32>
    %14 = arith.mulf %11, %11 : vector<1x1024xf32>
    %15 = arith.subf %13, %14 : vector<1x1024xf32>
    %cst_10 = arith.constant 0.000000e+00 : f32
    %16 = vector.broadcast %cst_10 : f32 to vector<1x1024xf32>
    %17 = arith.maximumf %15, %16 : vector<1x1024xf32>
    %cst_11 = arith.constant 9.99999974E-6 : f32
    %18 = vector.broadcast %cst_11 : f32 to vector<1x1024xf32>
    %19 = arith.addf %17, %18 : vector<1x1024xf32>
    %20 = math.rsqrt %19 : vector<1x1024xf32>
    %21 = arith.mulf %20, %3 : vector<1x1024xf32>
    %22 = arith.mulf %11, %21 : vector<1x1024xf32>
    %23 = arith.subf %4, %22 : vector<1x1024xf32>
    %24 = vector.broadcast %21 : vector<1x1024xf32> to vector<8x1024xf32>
    %25 = arith.mulf %2, %24 : vector<8x1024xf32>
    %26 = vector.broadcast %23 : vector<1x1024xf32> to vector<8x1024xf32>
    %27 = arith.addf %25, %26 : vector<8x1024xf32>
    %28 = arith.mulf %27, %27 : vector<8x1024xf32>
    %29 = arith.mulf %27, %28 : vector<8x1024xf32>
    %cst_12 = arith.constant 4.471500e-02 : f32
    %30 = vector.broadcast %cst_12 : f32 to vector<8x1024xf32>
    %31 = arith.mulf %30, %29 : vector<8x1024xf32>
    %32 = arith.addf %27, %31 : vector<8x1024xf32>
    %cst_13 = arith.constant 0.797884583 : f32
    %33 = vector.broadcast %cst_13 : f32 to vector<8x1024xf32>
    %34 = arith.mulf %33, %32 : vector<8x1024xf32>
    %35 = math.tanh %34 : vector<8x1024xf32>
    %cst_14 = arith.constant 1.000000e+00 : f32
    %36 = vector.broadcast %cst_14 : f32 to vector<8x1024xf32>
    %37 = arith.addf %36, %35 : vector<8x1024xf32>
    %cst_15 = arith.constant 5.000000e-01 : f32
    %38 = vector.broadcast %cst_15 : f32 to vector<8x1024xf32>
    %39 = arith.mulf %38, %37 : vector<8x1024xf32>
    %40 = arith.mulf %27, %39 : vector<8x1024xf32>
    %41 = arith.truncf %40 : vector<8x1024xf32> to vector<8x1024xbf16>
    %c0_16 = arith.constant 0 : index
    %c0_17 = arith.constant 0 : index
    %42 = vector.load %arg3[%c0_16, %c0_17] : memref<1024x16xbf16, #tpu.memory_space<vmem>>, vector<1024x16xbf16>
    %cst_18 = arith.constant dense<0.000000e+00> : vector<8x16xf32>
    %43 = tpu.matmul %41, %42, %cst_18 {dimension_numbers = #tpu.dot_dimension_numbers<[1], [0], [0], [1], [0, 0, 1, 1], [], []>} : vector<8x1024xbf16>, vector<1024x16xbf16>, vector<8x16xf32> -> vector<8x16xf32>
    %c0_19 = arith.constant 0 : index
    %c0_20 = arith.constant 0 : index
    %44 = vector.load %arg4[%c0_19, %c0_20] : memref<2x16xf32, #tpu.memory_space<vmem>>, vector<1x16xf32>
    %c1_21 = arith.constant 1 : index
    %c0_22 = arith.constant 0 : index
    %45 = vector.load %arg4[%c1_21, %c0_22] : memref<2x16xf32, #tpu.memory_space<vmem>>, vector<1x16xf32>
    %cst_23 = arith.constant dense<0.000000e+00> : vector<16xf32>
    %46 = vector.multi_reduction <add>, %43, %cst_23 [0] : vector<8x16xf32> to vector<16xf32>
    %47 = vector.shape_cast %46 : vector<16xf32> to vector<1x16xf32>
    %48 = arith.mulf %43, %43 : vector<8x16xf32>
    %cst_24 = arith.constant dense<0.000000e+00> : vector<16xf32>
    %49 = vector.multi_reduction <add>, %48, %cst_24 [0] : vector<8x16xf32> to vector<16xf32>
    %50 = vector.shape_cast %49 : vector<16xf32> to vector<1x16xf32>
    %cst_25 = arith.constant 1.250000e-01 : f32
    %51 = vector.broadcast %cst_25 : f32 to vector<1x16xf32>
    %52 = arith.mulf %47, %51 : vector<1x16xf32>
    %cst_26 = arith.constant 1.250000e-01 : f32
    %53 = vector.broadcast %cst_26 : f32 to vector<1x16xf32>
    %54 = arith.mulf %50, %53 : vector<1x16xf32>
    %55 = arith.mulf %52, %52 : vector<1x16xf32>
    %56 = arith.subf %54, %55 : vector<1x16xf32>
    %cst_27 = arith.constant 0.000000e+00 : f32
    %57 = vector.broadcast %cst_27 : f32 to vector<1x16xf32>
    %58 = arith.maximumf %56, %57 : vector<1x16xf32>
    %cst_28 = arith.constant 9.99999974E-6 : f32
    %59 = vector.broadcast %cst_28 : f32 to vector<1x16xf32>
    %60 = arith.addf %58, %59 : vector<1x16xf32>
    %61 = math.rsqrt %60 : vector<1x16xf32>
    %62 = arith.mulf %61, %44 : vector<1x16xf32>
    %63 = arith.mulf %52, %62 : vector<1x16xf32>
    %64 = arith.subf %45, %63 : vector<1x16xf32>
    %65 = vector.broadcast %62 : vector<1x16xf32> to vector<8x16xf32>
    %66 = arith.mulf %43, %65 : vector<8x16xf32>
    %67 = vector.broadcast %64 : vector<1x16xf32> to vector<8x16xf32>
    %68 = arith.addf %66, %67 : vector<8x16xf32>
    %69 = arith.mulf %68, %68 : vector<8x16xf32>
    %70 = arith.mulf %68, %69 : vector<8x16xf32>
    %cst_29 = arith.constant 4.471500e-02 : f32
    %71 = vector.broadcast %cst_29 : f32 to vector<8x16xf32>
    %72 = arith.mulf %71, %70 : vector<8x16xf32>
    %73 = arith.addf %68, %72 : vector<8x16xf32>
    %cst_30 = arith.constant 0.797884583 : f32
    %74 = vector.broadcast %cst_30 : f32 to vector<8x16xf32>
    %75 = arith.mulf %74, %73 : vector<8x16xf32>
    %76 = math.tanh %75 : vector<8x16xf32>
    %cst_31 = arith.constant 1.000000e+00 : f32
    %77 = vector.broadcast %cst_31 : f32 to vector<8x16xf32>
    %78 = arith.addf %77, %76 : vector<8x16xf32>
    %cst_32 = arith.constant 5.000000e-01 : f32
    %79 = vector.broadcast %cst_32 : f32 to vector<8x16xf32>
    %80 = arith.mulf %79, %78 : vector<8x16xf32>
    %81 = arith.mulf %68, %80 : vector<8x16xf32>
    %c0_33 = arith.constant 0 : index
    %c0_34 = arith.constant 0 : index
    %82 = vector.load %arg5[%c0_33, %c0_34] : memref<8x16xf32, #tpu.memory_space<vmem>>, vector<8x16xf32>
    tpu.vector_store %arg5[%c0_33, %c0_34], %81 {strides = array<i32>} : memref<8x16xf32, #tpu.memory_space<vmem>>, vector<8x16xf32>,
    return
  }
}

</mosaic_0001>

<bundles_post_ra>
// kernel: tpu_custom_call.1
= control target key start
LH: loop header
LB: loop body
LE: loop exit
PB: predicated region body
PF: predicated region fallthrough
CT: control target
= control target key end

     0   :  { %v1767_v8 = vmov 0   ;;  %vm119_vm0 = vcmask 261120   ;;  %s2274_s0 = inlined_call_operand.vmem [shape: bf16[8,32], index: 0, kind: input, shape index: {}]   ;;  %s2275_s1 = inlined_call_operand.vmem [shape: bf16[32,1024], index: 1, kind: input, shape index: {}]   ;;  %s2276_s2 = inlined_call_operand.vmem [shape: f32[2,1024], index: 2, kind: input, shape index: {}]   ;;  %s2277_s3 = inlined_call_operand.vmem [shape: bf16[1024,16], index: 3, kind: input, shape index: {}]   ;;  %s2278_s4 = inlined_call_operand.vmem [shape: f32[2,16], index: 4, kind: input, shape index: {}]   ;;  %s2279_s5 = inlined_call_operand.hbm [shape: f32[8,16], index: 5, kind: output, shape index: {}]  }
   0x1   :  { %v31_v0 = vld [vmem:[%s2275_s1 + $0x40] sm:$0xff]  ;;  %v32_v2 = vld [vmem:[%s2275_s1 + $0x48] sm:$0xff]  ;;  %155 = vmatprep.mubr.bf16.mxu0 %v1767_v8  ;;  %196 = vmatprep.mubr.bf16.mxu1 %v1767_v8  ;;  %v33_v15 = vld [vmem:[%s2275_s1 + $0x50] sm:$0xff] }
   0x2   :  { %v35_v1 = vld [vmem:[%s2275_s1 + $0x60] sm:$0xff]  ;;  %v36_v4 = vld [vmem:[%s2275_s1 + $0x68] sm:$0xff]  ;;  %v37_v16 = vld [vmem:[%s2275_s1 + $0x70] sm:$0xff] }
   0x3   :  { %v1478_v3 = vcombine.high %v31_v0, %v35_v1  ;;  %v1477_v5 = vcombine.low %v31_v0, %v35_v1  ;;  %v23_v6 = vld [vmem:[%s2275_s1] sm:$0xff]  ;;  %v1480_v9 = vcombine.high %v32_v2, %v36_v4  ;;  %v1479_v10 = vcombine.low %v32_v2, %v36_v4  ;;  %v24_v12 = vld [vmem:[%s2275_s1 + $0x8] sm:$0xff]  ;;  %v34_v17 = vld [vmem:[%s2275_s1 + $0x58] sm:$0xff] }
   0x4   :  { %v27_v7 = vld [vmem:[%s2275_s1 + $0x20] sm:$0xff]  ;;  %v28_v13 = vld [vmem:[%s2275_s1 + $0x28] sm:$0xff]  ;;  %v38_v19 = vld [vmem:[%s2275_s1 + $0x78] sm:$0xff]  ;;  %v1482_v23 = vcombine.high %v33_v15, %v37_v16  ;;  %v1481_v28 = vcombine.low %v33_v15, %v37_v16 }
   0x5   :  { %v1470_v11 = vcombine.high %v23_v6, %v27_v7  ;;  %135 = vmatprep.subr.bf16.mxu0 %v1478_v3  ;;  %v1472_v14 = vcombine.high %v24_v12, %v28_v13  ;;  %176 = vmatprep.subr.bf16.mxu1 %v1480_v9  ;;  %v1469_v18 = vcombine.low %v23_v6, %v27_v7  ;;  %v25_v20 = vld [vmem:[%s2275_s1 + $0x10] sm:$0xff]  ;;  %v26_v24 = vld [vmem:[%s2275_s1 + $0x18] sm:$0xff]  ;;  %v22_v26 = vld [vmem:[%s2274_s0] sm:$0xf] }
   0x6   :  { %136 = vmatpush1.bf16.msra.mxu0 %v1477_v5  ;;  %v29_v21 = vld [vmem:[%s2275_s1 + $0x30] sm:$0xff]  ;;  %177 = vmatpush1.bf16.msra.mxu1 %v1479_v10  ;;  %v1471_v22 = vcombine.low %v24_v12, %v28_v13  ;;  %v30_v25 = vld [vmem:[%s2275_s1 + $0x38] sm:$0xff]  ;;  %v1484_v27 = vcombine.high %v34_v17, %v38_v19  ;;  %v1483_v29 = vcombine.low %v34_v17, %v38_v19 }
   0x7   :  { %137 = vmatprep.subr.bf16.mxu0 %v1470_v11  ;;  %178 = vmatprep.subr.bf16.mxu1 %v1472_v14  ;;  %v1474_v30 = vcombine.high %v25_v20, %v29_v21  ;;  %v1476_v31 = vcombine.high %v26_v24, %v30_v25  ;;  %v1473_v32 = vcombine.low %v25_v20, %v29_v21 }
   0x8   :  { %v1475_v33 = vcombine.low %v26_v24, %v30_v25 }
   0xa   :  { %138 = vmatpush1.bf16.msra.mxu0 %v1469_v18  ;;  %179 = vmatpush1.bf16.msra.mxu1 %v1471_v22 }
   0xb   :  { %217 = vmatprep.subr.bf16.mxu0 %v1482_v23  ;;  %258 = vmatprep.subr.bf16.mxu1 %v1484_v27 }
   0xd   :  { %1485 = vmatmul.mubr.msk.bf16.vlgmr.msra.gmra.mxu0 %vm119_vm0, %v22_v26  ;;  %1486 = vmatmul.mubr.msk.bf16.vlgmr.msra.gmra.mxu1 %vm119_vm0, %v22_v26 }
   0xe   :  { %218 = vmatpush1.bf16.msra.mxu0 %v1481_v28  ;;  %259 = vmatpush1.bf16.msra.mxu1 %v1483_v29 }
   0xf   :  { %219 = vmatprep.subr.bf16.mxu0 %v1474_v30  ;;  %260 = vmatprep.subr.bf16.mxu1 %v1476_v31 }
  0x10   :  { %237 = vmatprep.mubr.bf16.mxu0 %v1767_v8  ;;  %278 = vmatprep.mubr.bf16.mxu1 %v1767_v8 }
  0x12   :  { %220 = vmatpush1.bf16.msra.mxu0 %v1473_v32  ;;  %261 = vmatpush1.bf16.msra.mxu1 %v1475_v33 }
  0x15   :  { %1487 = vmatmul.mubr.msk.bf16.vlgmr.msra.gmra.mxu0 %vm119_vm0, %v22_v26  ;;  %1488 = vmatmul.mubr.msk.bf16.vlgmr.msra.gmra.mxu1 %vm119_vm0, %v22_v26 }
  0x16   :  { %10 = vsyncpa [#allocation3], 0  ;;  %v1645_v34 = vld [vmem:[%s2277_s3 + $0x78] sm:$0xff]   ;;  %v1649_v38 = vld [vmem:[%s2277_s3 + $0x70] sm:$0xff]   ;;  %vm1409_vm1 = vcmask 130048   ;;  %s1769_s24 = smov [#allocation2]  }
  0x17   :  { %v1646_v35 = vld [vmem:[%s2277_s3 + $0xf8] sm:$0xff]   ;;  %1554 = vmatprep.subr.bf16.mxu0 %v1645_v34  ;;  %v1650_v39 = vld [vmem:[%s2277_s3 + $0xf0] sm:$0xff]   ;;  %v1653_v42 = vld [vmem:[%s2277_s3 + $0x68] sm:$0xff]   ;;  %s1461_s25 = sshll.u32 %s1769_s24, 4  ;;  %s1462_s25 = int_to_ptr.vmem [resolvable:$true] %s1461_s25 }
  0x18   :  { %v1647_v36 = vld [vmem:[%s2277_s3 + $0x38] sm:$0xff]   ;;  %1576 = vmatprep.subr.bf16.mxu1 %v1646_v35  ;;  %v1651_v40 = vld [vmem:[%s2277_s3 + $0x30] sm:$0xff]   ;;  %v1654_v43 = vld [vmem:[%s2277_s3 + $0xe8] sm:$0xff]   ;;  %p1750_p1 = scmp.lt.s32.totalorder %s1462_s25, %s1462_s25 }
  0x19   :  { %v1648_v37 = vld [vmem:[%s2277_s3 + $0xb8] sm:$0xff]   ;;  %1555 = vmatpush3.bf16.msra.mxu0 %v1647_v36  ;;  %v1652_v41 = vld [vmem:[%s2277_s3 + $0xb0] sm:$0xff]   ;;  %v1655_v44 = vld [vmem:[%s2277_s3 + $0x28] sm:$0xff]  }
  0x1a   :  { %1577 = vmatpush3.bf16.msra.mxu1 %v1648_v37  ;;  %1556 = vmatprep.subr.bf16.mxu0 %v1649_v38  ;;  %v1656_v45 = vld [vmem:[%s2277_s3 + $0xa8] sm:$0xff]   ;;  %v1657_v46 = vld [vmem:[%s2277_s3 + $0x60] sm:$0xff]   ;;  %v1661_v50 = vld [vmem:[%s2277_s3 + $0x58] sm:$0xff]  }
  0x1b   :  { %1578 = vmatprep.subr.bf16.mxu1 %v1650_v39  ;;  %v1658_v47 = vld [vmem:[%s2277_s3 + $0xe0] sm:$0xff]   ;;  %v1662_v51 = vld [vmem:[%s2277_s3 + $0xd8] sm:$0xff]   ;;  %v1665_v54 = vld [vmem:[%s2277_s3 + $0x50] sm:$0xff]  }
  0x1c   :  { %v1659_v48 = vld [vmem:[%s2277_s3 + $0x20] sm:$0xff]   ;;  %v1663_v52 = vld [vmem:[%s2277_s3 + $0x18] sm:$0xff]   ;;  %v1666_v55 = vld [vmem:[%s2277_s3 + $0xd0] sm:$0xff]  }
  0x1d   :  { %1557 = vmatpush3.bf16.msra.mxu0 %v1651_v40  ;;  %v1660_v49 = vld [vmem:[%s2277_s3 + $0xa0] sm:$0xff]   ;;  %v1664_v53 = vld [vmem:[%s2277_s3 + $0x98] sm:$0xff]   ;;  %v1667_v56 = vld [vmem:[%s2277_s3 + $0x10] sm:$0xff]  }
  0x1e   :  { %1579 = vmatpush3.bf16.msra.mxu1 %v1652_v41  ;;  %1558 = vmatprep.subr.bf16.mxu0 %v1653_v42  ;;  %v1668_v57 = vld [vmem:[%s2277_s3 + $0x90] sm:$0xff]   ;;  %v1669_v58 = vld [vmem:[%s2277_s3 + $0x48] sm:$0xff]   ;;  %v1673_v62 = vld [vmem:[%s2277_s3 + $0x40] sm:$0xff]  }
  0x1f   :  { %1580 = vmatprep.subr.bf16.mxu1 %v1654_v43  ;;  %v1670_v59 = vld [vmem:[%s2277_s3 + $0xc8] sm:$0xff]   ;;  %v1674_v63 = vld [vmem:[%s2277_s3 + $0xc0] sm:$0xff]   ;;  %v1677_v2 = vld [vmem:[%s2277_s3 + $0x178] sm:$0xff]  }
  0x20   :  { %v1671_v60 = vld [vmem:[%s2277_s3 + $0x8] sm:$0xff]   ;;  %v1675_v0 = vld [vmem:[%s2277_s3] sm:$0xff]   ;;  %v1678_v3 = vld [vmem:[%s2277_s3 + $0x1f8] sm:$0xff]  }
  0x21   :  { %1559 = vmatpush3.bf16.msra.mxu0 %v1655_v44  ;;  %v1672_v61 = vld [vmem:[%s2277_s3 + $0x88] sm:$0xff]   ;;  %v1676_v1 = vld [vmem:[%s2277_s3 + $0x80] sm:$0xff]  }
  0x22   :  { %1581 = vmatpush3.bf16.msra.mxu1 %v1656_v45  ;;  %1560 = vmatprep.subr.bf16.mxu0 %v1657_v46 }
  0x23   :  { %1582 = vmatprep.subr.bf16.mxu1 %v1658_v47 }
  0x25   :  { %1561 = vmatpush3.bf16.msra.mxu0 %v1659_v48 }
  0x26   :  { %1583 = vmatpush3.bf16.msra.mxu1 %v1660_v49  ;;  %1562 = vmatprep.subr.bf16.mxu0 %v1661_v50 }
  0x27   :  { %1584 = vmatprep.subr.bf16.mxu1 %v1662_v51 }
  0x29   :  { %1563 = vmatpush3.bf16.msra.mxu0 %v1663_v52 }
  0x2a   :  { %1585 = vmatpush3.bf16.msra.mxu1 %v1664_v53  ;;  %1564 = vmatprep.subr.bf16.mxu0 %v1665_v54 }
  0x2b   :  { %1586 = vmatprep.subr.bf16.mxu1 %v1666_v55 }
  0x2d   :  { %1565 = vmatpush3.bf16.msra.mxu0 %v1667_v56 }
  0x2e   :  { %1587 = vmatpush3.bf16.msra.mxu1 %v1668_v57  ;;  %1566 = vmatprep.subr.bf16.mxu0 %v1669_v58 }
  0x2f   :  { %1588 = vmatprep.subr.bf16.mxu1 %v1670_v59 }
  0x31   :  { %1567 = vmatpush3.bf16.msra.mxu0 %v1671_v60 }
  0x32   :  { %1589 = vmatpush3.bf16.msra.mxu1 %v1672_v61  ;;  %1568 = vmatprep.subr.bf16.mxu0 %v1673_v62 }
  0x33   :  { %1590 = vmatprep.subr.bf16.mxu1 %v1674_v63 }
  0x35   :  { %1569 = vmatpush3.bf16.msra.mxu0 %v1675_v0 }
  0x36   :  { %1591 = vmatpush3.bf16.msra.mxu1 %v1676_v1  ;;  %1598 = vmatprep.subr.bf16.mxu0 %v1677_v2 }
  0x37   :  { %1620 = vmatprep.subr.bf16.mxu1 %v1678_v3 }
  0xcd   :  { %v1957_v4 = vpop.f32.mrf.mxu0  ;;  %v1962_v7 = vpop.f32.mrf.mxu1 }
  0xce   :  { %v290_v5 = vrot.slane %v1957_v4, 4  ;;  %v338_v6 = vmul.f32 %v1957_v4, %v1957_v4  ;;  %v302_v8 = vrot.slane %v1962_v7, 4  ;;  %v340_v9 = vmul.f32 %v1962_v7, %v1962_v7 }
  0xcf   :  { %v1967_v10 = vpop.f32.mrf.mxu0  ;;  %v1973_v15 = vpop.f32.mrf.mxu1 }
  0xd0   :  { %v291_v11 = vadd.f32 %v290_v5, %v1957_v4  ;;  %v346_v12 = vrot.slane %v338_v6, 4  ;;  %v296_v13 = vrot.slane %v1967_v10, 4  ;;  %v339_v14 = vmul.f32 %v1967_v10, %v1967_v10 }
  0xd1   :  { %v303_v16 = vadd.f32 %v302_v8, %v1962_v7  ;;  %v358_v17 = vrot.slane %v340_v9, 4  ;;  %v308_v18 = vrot.slane %v1973_v15, 4  ;;  %v341_v19 = vmul.f32 %v1973_v15, %v1973_v15  ;;  %v161_v20 = vpop.f32.mrf.mxu0  ;;  %v202_v25 = vpop.f32.mrf.mxu1 }
  0xd2   :  { %v292_v21 = vrot.slane %v291_v11, 2  ;;  %v347_v22 = vadd.f32 %v346_v12, %v338_v6  ;;  %v297_v23 = vadd.f32 %v296_v13, %v1967_v10  ;;  %v352_v24 = vrot.slane %v339_v14, 4 }
  0xd3   :  { %v304_v26 = vrot.slane %v303_v16, 2  ;;  %v359_v27 = vadd.f32 %v358_v17, %v340_v9  ;;  %v309_v28 = vadd.f32 %v308_v18, %v1973_v15  ;;  %v364_v29 = vrot.slane %v341_v19, 4  ;;  %v162_v30 = vpop.f32.mrf.mxu0  ;;  %v203_v35 = vpop.f32.mrf.mxu1 }
  0xd4   :  { %v293_v31 = vadd.f32 %v292_v21, %v291_v11  ;;  %v348_v32 = vrot.slane %v347_v22, 2  ;;  %v298_v33 = vrot.slane %v297_v23, 2  ;;  %v353_v34 = vadd.f32 %v352_v24, %v339_v14 }
  0xd5   :  { %v305_v36 = vadd.f32 %v304_v26, %v303_v16  ;;  %v360_v37 = vrot.slane %v359_v27, 2  ;;  %v310_v38 = vrot.slane %v309_v28, 2  ;;  %v365_v39 = vadd.f32 %v364_v29, %v341_v19  ;;  %v1981_v40 = vpop.f32.mrf.mxu0  ;;  %v1983_v45 = vpop.f32.mrf.mxu1 }
  0xd6   :  { %v294_v41 = vrot.slane %v293_v31, 1  ;;  %v349_v42 = vadd.f32 %v348_v32, %v347_v22  ;;  %v299_v43 = vadd.f32 %v298_v33, %v297_v23  ;;  %v354_v44 = vrot.slane %v353_v34, 2 }
  0xd7   :  { %v311_v46 = vadd.f32 %v310_v38, %v309_v28  ;;  %v366_v47 = vrot.slane %v365_v39, 2  ;;  %v1985_v48 = vpop.f32.mrf.mxu0  ;;  %v306_v49 = vrot.slane %v305_v36, 1  ;;  %v361_v50 = vadd.f32 %v360_v37, %v359_v27  ;;  %v1987_v53 = vpop.f32.mrf.mxu1 }
  0xd8   :  { %v300_v51 = vrot.slane %v299_v43, 1  ;;  %v355_v52 = vadd.f32 %v354_v44, %v353_v34  ;;  %v295_v54 = vadd.f32 %v294_v41, %v293_v31  ;;  %v350_v55 = vrot.slane %v349_v42, 1 }
  0xd9   :  { %v312_v56 = vrot.slane %v311_v46, 1  ;;  %v367_v57 = vadd.f32 %v366_v47, %v365_v39  ;;  %v243_v58 = vpop.f32.mrf.mxu0  ;;  %v284_v61 = vpop.f32.mrf.mxu1  ;;  %v307_v1 = vadd.f32 %v306_v49, %v305_v36  ;;  %v362_v2 = vrot.slane %v361_v50, 1 }
  0xda   :  { %v301_v59 = vadd.f32 %v300_v51, %v299_v43  ;;  %v356_v60 = vrot.slane %v355_v52, 1  ;;  %v351_v5 = vadd.f32 %v350_v55, %v349_v42  ;;  %v1989_v6 = vmul.f32 0.125, %v295_v54 }
  0xdb   :  { %v313_v62 = vadd.f32 %v312_v56, %v311_v46  ;;  %v368_v63 = vrot.slane %v367_v57, 1  ;;  %v244_v0 = vpop.f32.mrf.mxu0  ;;  %v285_v3 = vpop.f32.mrf.mxu1  ;;  %v314_v11 = vrot.slane %v1981_v40, 4  ;;  %v342_v14 = vmul.f32 %v1981_v40, %v1981_v40 }
  0xdc   :  { %v357_v8 = vadd.f32 %v356_v60, %v355_v52  ;;  %v1991_v9 = vmul.f32 0.125, %v301_v59  ;;  %v363_v16 = vadd.f32 %v362_v2, %v361_v50  ;;  %v1998_v17 = vmul.f32 0.125, %v307_v1 }
  0xdd   :  { %v369_v12 = vadd.f32 %v368_v63, %v367_v57  ;;  %v1994_v13 = vmul.f32 0.125, %v313_v62  ;;  %v315_v18 = vadd.f32 %v314_v11, %v1981_v40  ;;  %v326_v19 = vrot.slane %v1983_v45, 4 }
  0xde   :  { %v402_v20 = vmul.f32 0.125, %v351_v5  ;;  %v410_v21 = vmul.f32 %v1989_v6, %v1989_v6  ;;  %v370_v22 = vrot.slane %v342_v14, 4  ;;  %v344_v23 = vmul.f32 %v1983_v45, %v1983_v45 }
  0xdf   :  { %v403_v24 = vmul.f32 0.125, %v357_v8  ;;  %v411_v25 = vmul.f32 %v1991_v9, %v1991_v9  ;;  %v316_v26 = vrot.slane %v315_v18, 2  ;;  %v327_v27 = vadd.f32 %v326_v19, %v1983_v45 }
  0xe0   :  { %v405_v28 = vmul.f32 0.125, %v369_v12  ;;  %v413_v29 = vmul.f32 %v1994_v13, %v1994_v13  ;;  %v371_v30 = vadd.f32 %v370_v22, %v342_v14  ;;  %v382_v31 = vrot.slane %v344_v23, 4 }
  0xe1   :  { %v404_v32 = vmul.f32 0.125, %v363_v16  ;;  %v317_v33 = vadd.f32 %v316_v26, %v315_v18  ;;  %v328_v34 = vrot.slane %v327_v27, 2  ;;  %v418_v35 = vsub.f32 %v402_v20, %v410_v21 }
  0xe2   :  { %v412_v36 = vmul.f32 %v1998_v17, %v1998_v17  ;;  %v372_v37 = vrot.slane %v371_v30, 2  ;;  %v383_v38 = vadd.f32 %v382_v31, %v344_v23  ;;  %v419_v39 = vsub.f32 %v403_v24, %v411_v25 }
  0xe3   :  { %v318_v41 = vrot.slane %v317_v33, 1  ;;  %v329_v42 = vadd.f32 %v328_v34, %v327_v27  ;;  %v320_v43 = vrot.slane %v1985_v48, 4  ;;  %v421_v44 = vsub.f32 %v405_v28, %v413_v29 }
  0xe4   :  { %v373_v46 = vadd.f32 %v372_v37, %v371_v30  ;;  %v384_v47 = vrot.slane %v383_v38, 2  ;;  %v343_v49 = vmul.f32 %v1985_v48, %v1985_v48  ;;  %v332_v54 = vrot.slane %v1987_v53, 4 }
  0xe5   :  { %v319_v50 = vadd.f32 %v318_v41, %v317_v33  ;;  %v330_v51 = vrot.slane %v329_v42, 1  ;;  %v321_v52 = vadd.f32 %v320_v43, %v1985_v48  ;;  %v345_v58 = vmul.f32 %v1987_v53, %v1987_v53 }
  0xe6   :  { %v374_v55 = vrot.slane %v373_v46, 1  ;;  %v385_v56 = vadd.f32 %v384_v47, %v383_v38  ;;  %v376_v57 = vrot.slane %v343_v49, 4  ;;  %v333_v62 = vadd.f32 %v332_v54, %v1987_v53 }
  0xe7   :  { %v2020_v59 = vmul.f32 0.125, %v319_v50  ;;  %v331_v60 = vadd.f32 %v330_v51, %v329_v42  ;;  %v322_v61 = vrot.slane %v321_v52, 2  ;;  %v388_v2 = vrot.slane %v345_v58, 4 }
  0xe8   :  { %v375_v63 = vadd.f32 %v374_v55, %v373_v46  ;;  %v386_v0 = vrot.slane %v385_v56, 1  ;;  %v377_v1 = vadd.f32 %v376_v57, %v343_v49  ;;  %v334_v11 = vrot.slane %v333_v62, 2 }
  0xe9   :  { %v414_v3 = vmul.f32 %v2020_v59, %v2020_v59  ;;  %v2025_v5 = vmul.f32 0.125, %v331_v60  ;;  %v323_v8 = vadd.f32 %v322_v61, %v321_v52  ;;  %v389_v18 = vadd.f32 %v388_v2, %v345_v58 }
  0xea   :  { %v406_v12 = vmul.f32 0.125, %v375_v63  ;;  %v387_v14 = vadd.f32 %v386_v0, %v385_v56  ;;  %v378_v16 = vrot.slane %v377_v1, 2  ;;  %v420_v19 = vsub.f32 %v404_v32, %v412_v36 }
  0xeb   :  { %v324_v20 = vrot.slane %v323_v8, 1  ;;  %v335_v21 = vadd.f32 %v334_v11, %v333_v62  ;;  %v427_v22 = vmax.f32 %v419_v39, 0.0  ;;  %v429_v23 = vmax.f32 %v421_v44, 0.0 }
  0xec   :  { %v416_v24 = vmul.f32 %v2025_v5, %v2025_v5  ;;  %v379_v25 = vadd.f32 %v378_v16, %v377_v1  ;;  %v422_v26 = vsub.f32 %v406_v12, %v414_v3  ;;  %v408_v27 = vmul.f32 0.125, %v387_v14 }
  0xed   :  { %v325_v28 = vadd.f32 %v324_v20, %v323_v8  ;;  %v390_v29 = vrot.slane %v389_v18, 2  ;;  %v426_v30 = vmax.f32 %v418_v35, 0.0  ;;  %v336_v33 = vrot.slane %v335_v21, 1  ;;  %v287_v8 = vld [vmem:[%s2276_s2] ss:$2 sm:$0xff] }
  0xee   :  { %v380_v31 = vrot.slane %v379_v25, 1  ;;  %v428_v34 = vmax.f32 %v420_v19, 0.0  ;;  %v435_v38 = vadd.f32 1e-05, %v427_v22  ;;  %v437_v36 = vadd.f32 1e-05, %v429_v23 }
  0xef   :  { %v2029_v37 = vmul.f32 0.125, %v325_v28  ;;  %v430_v41 = vmax.f32 %v422_v26, 0.0  ;;  %v424_v39 = vsub.f32 %v408_v27, %v416_v24  ;;  %v391_v42 = vadd.f32 %v390_v29, %v389_v18 }
  0xf0   :  { %v381_v32 = vadd.f32 %v380_v31, %v379_v25  ;;  %v434_v43 = vadd.f32 1e-05, %v426_v30  ;;  %v337_v46 = vadd.f32 %v336_v33, %v335_v21  ;;  %v436_v47 = vadd.f32 1e-05, %v428_v34 }
  0xf1   :  { %v415_v44 = vmul.f32 %v2029_v37, %v2029_v37  ;;  %1709 = vrsqrt.f32 %v435_v38  ;;  %v438_v35 = vadd.f32 1e-05, %v430_v41  ;;  %v432_v50 = vmax.f32 %v424_v39, 0.0 }
  0xf2   :  { %v407_v49 = vmul.f32 0.125, %v381_v32  ;;  %1711 = vrsqrt.f32 %v437_v36  ;;  %v392_v51 = vrot.slane %v391_v42, 1  ;;  %v451_v52 = vlaneseq }
  0xf3   :  { %1713 = vrsqrt.f32 %v434_v43  ;;  %v2033_v55 = vmul.f32 0.125, %v337_v46  ;;  %v440_v60 = vadd.f32 1e-05, %v432_v50  ;;  %v1768_v27 = vmov 1966171168  }
  0xf4   :  { %v423_v54 = vsub.f32 %v407_v49, %v415_v44  ;;  %1715 = vrsqrt.f32 %v436_v47  ;;  %v393_v56 = vadd.f32 %v392_v51, %v391_v42  ;;  %v2037_v62 = vshrl.u32 %v451_v52, 7 }
  0xf5   :  { %v417_v58 = vmul.f32 %v2033_v55, %v2033_v55  ;;  %1717 = vrsqrt.f32 %v438_v35  ;;  %v520_v28 = vunpack.c.l.s4 %v1768_v27 }
  0xf6   :  { %v431_v57 = vmax.f32 %v423_v54, 0.0  ;;  %v409_v61 = vmul.f32 0.125, %v393_v56  ;;  %v457_v1 = vsub.s32 1, %v2037_v62  ;;  %v465_v2 = vsub.s32 3, %v2037_v62 }
  0xf7   :  { %v2045_v11 = vsub.s32 0, %v2037_v62  ;;  %v461_v12 = vsub.s32 2, %v2037_v62  ;;  %v469_v20 = vsub.s32 4, %v2037_v62  ;;  %v473_v22 = vsub.s32 5, %v2037_v62 }
  0xf8   :  { %v439_v63 = vadd.f32 1e-05, %v431_v57  ;;  %v425_v0 = vsub.f32 %v409_v61, %v417_v58  ;;  %v458_v16 = vrot.slane %v287_v8, %v457_v1  ;;  %v466_v19 = vrot.slane %v287_v8, %v465_v2 }
  0xf9   :  { %v454_v24 = vrot.slane %v287_v8, %v2045_v11  ;;  %v462_v25 = vrot.slane %v287_v8, %v461_v12  ;;  %v470_v31 = vrot.slane %v287_v8, %v469_v20  ;;  %v477_v33 = vsub.s32 6, %v2037_v62 }
  0xfa   :  { %1719 = vrsqrt.f32 %v439_v63  ;;  %v433_v3 = vmax.f32 %v425_v0, 0.0  ;;  %v474_v38 = vrot.slane %v287_v8, %v473_v22  ;;  %v481_v41 = vsub.s32 7, %v2037_v62 }
  0xfb   :  { %1721 = vrsqrt.f32 %v440_v60  ;;  %v521_v39 = vunpack.c.0.s8 %v520_v28  ;;  %v478_v47 = vrot.slane %v287_v8, %v477_v33 }
  0xfc   :  { %v441_v14 = vadd.f32 1e-05, %v433_v3  ;;  %v482_v52 = vrot.slane %v287_v8, %v481_v41 }
  0xfd   :  { %v524_v54 = vsub.s32 %v521_v39, %v2037_v62 }
  0xfe   :  { %v1710_v18 = vpop.eup %1709  ;;  %1723 = vrsqrt.f32 %v441_v14 }
  0xff   :  { %v1712_v21 = vpop.eup %1711  ;;  %v492_v29 = vmul.f32 %v1710_v18, %v458_v16 }
 0x100   :  { %v1714_v23 = vpop.eup %1713  ;;  %v494_v30 = vmul.f32 %v1712_v21, %v466_v19 }
 0x101   :  { %v1716_v26 = vpop.eup %1715  ;;  %v491_v32 = vmul.f32 %v1714_v23, %v454_v24  ;;  %v500_v43 = vmul.f32 %v492_v29, %v1991_v9  ;;  %v573_v23 = vrot.slane %v492_v29, %v2045_v11 }
 0x102   :  { %v1718_v34 = vpop.eup %1717  ;;  %v493_v36 = vmul.f32 %v1716_v26, %v462_v25  ;;  %v502_v44 = vmul.f32 %v494_v30, %v1994_v13  ;;  %v581_v24 = vrot.slane %v494_v30, %v2045_v11  ;;  %v1489_v25 = vld [vmem:[%s2276_s2 + $0x1] ss:$2 sm:$0xff] }
 0x103   :  { %v2065_v46 = vmul.f32 %v1718_v34, %v470_v31  ;;  %v499_v50 = vmul.f32 %v491_v32, %v1989_v6  ;;  %v599_v34 = vmul.f32 %v573_v23, %v1967_v10 }
 0x104   :  { %v501_v51 = vmul.f32 %v493_v36, %v1998_v17  ;;  %v577_v26 = vrot.slane %v493_v36, %v2045_v11  ;;  %v601_v29 = vmul.f32 %v581_v24, %v1973_v15 }
 0x105   :  { %v515_v57 = vcombine.low %v499_v50, %v500_v43  ;;  %v503_v13 = vmul.f32 %v2065_v46, %v2020_v59  ;;  %v569_v59 = vrot.slane %v491_v32, %v2045_v11 }
 0x106   :  { %v516_v9 = vcombine.low %v501_v51, %v502_v44 }
 0x107   :  { %v1720_v42 = vpop.eup %1719  ;;  %v525_v0 = vrot.slane %v515_v57, %v524_v54  ;;  %v598_v31 = vmul.f32 %v569_v59, %v1957_v4 }
 0x108   :  { %v1722_v49 = vpop.eup %1721  ;;  %v496_v35 = vmul.f32 %v1720_v42, %v474_v38  ;;  %v532_v3 = vrot.slane %v516_v9, %v524_v54  ;;  %v600_v42 = vmul.f32 %v577_v26, %v1962_v7 }
 0x109   :  { %v2075_v58 = vmul.f32 %v1722_v49, %v478_v47 }
 0x10a   :  { %v504_v56 = vmul.f32 %v496_v35, %v2029_v37  ;;  %v547_v37 = vcombine.low %v525_v0, %v532_v3  ;;  %v589_v27 = vrot.slane %v496_v35, %v2045_v11  ;;  %v585_v0 = vrot.slane %v2065_v46, %v2045_v11 }
 0x10b   :  { %v1724_v60 = vpop.eup %1723  ;;  %v505_v6 = vmul.f32 %v2075_v58, %v2025_v5 }
 0x10c   :  { %v517_v61 = vcombine.low %v503_v13, %v504_v56  ;;  %v498_v63 = vmul.f32 %v1724_v60, %v482_v52  ;;  %v555_v19 = vrot.slane %v547_v37, %v524_v54  ;;  %v603_v43 = vmul.f32 %v589_v27, %v1985_v48 }
 0x10d   :  { %v602_v24 = vmul.f32 %v585_v0, %v1981_v40 }
 0x10e   :  { %v506_v17 = vmul.f32 %v498_v63, %v2033_v55  ;;  %v539_v8 = vrot.slane %v517_v61, %v524_v54  ;;  %v597_v5 = vrot.slane %v498_v63, %v2045_v11 }
 0x110   :  { %v518_v14 = vcombine.low %v505_v6, %v506_v17  ;;  %v605_v30 = vmul.f32 %v597_v5, %v1987_v53 }
 0x112   :  { %v546_v16 = vrot.slane %v518_v14, %v524_v54 }
 0x114   :  { %v548_v18 = vcombine.low %v539_v8, %v546_v16  ;;  %v593_v8 = vrot.slane %v2075_v58, %v2045_v11 }
 0x116   :  { %v562_v21 = vrot.slane %v548_v18, %v524_v54 }
 0x118   :  { %v563_v55 = vcombine.low %v555_v19, %v562_v21 }
 0x11a   :  { %v565_v28 = vsub.f32 %v1489_v25, %v563_v55  ;;  %v604_v25 = vmul.f32 %v593_v8, %v1983_v45  ;;  %v1686_v8 = vld [vmem:[%s2277_s3 + $0x1e8] sm:$0xff]  }
 0x11c   :  { %v638_v38 = vrot.slane %v565_v28, %v481_v41  ;;  %v614_v32 = vrot.slane %v565_v28, %v457_v1  ;;  %v622_v39 = vrot.slane %v565_v28, %v465_v2  ;;  %v610_v36 = vrot.slane %v565_v28, %v2045_v11 }
 0x11d   :  { %v618_v4 = vrot.slane %v565_v28, %v461_v12  ;;  %v630_v10 = vrot.slane %v565_v28, %v473_v22  ;;  %v626_v46 = vrot.slane %v565_v28, %v469_v20  ;;  %v634_v23 = vrot.slane %v565_v28, %v477_v33 }
 0x11e   :  { %v2104_v15 = vadd.f32 %v638_v38, %v605_v30  ;;  %v2106_v53 = vadd.f32 %v614_v32, %v599_v34  ;;  %v2108_v1 = vadd.f32 %v622_v39, %v601_v29  ;;  %v2110_v41 = vadd.f32 %v610_v36, %v598_v31 }
 0x11f   :  { %v2112_v2 = vadd.f32 %v618_v4, %v600_v42  ;;  %v2114_v44 = vadd.f32 %v630_v10, %v603_v43  ;;  %v2150_v55 = vadd.f32 %v626_v46, %v602_v24  ;;  %v2152_v26 = vadd.f32 %v634_v23, %v604_v25  ;;  %v1693_v46 = vld [vmem:[%s2277_s3 + $0x158] sm:$0xff]  }
 0x120   :  { %v662_v7 = vmul.f32 %v2104_v15, %v2104_v15  ;;  %v656_v48 = vmul.f32 %v2106_v53, %v2106_v53  ;;  %v658_v12 = vmul.f32 %v2108_v1, %v2108_v1  ;;  %v655_v22 = vmul.f32 %v2110_v41, %v2110_v41  ;;  %v1695_v23 = vld [vmem:[%s2277_s3 + $0x118] sm:$0xff]  }
 0x121   :  { %v657_v47 = vmul.f32 %v2112_v2, %v2112_v2  ;;  %v660_v49 = vmul.f32 %v2114_v44, %v2114_v44  ;;  %v659_v62 = vmul.f32 %v2150_v55, %v2150_v55  ;;  %v661_v40 = vmul.f32 %v2152_v26, %v2152_v26  ;;  %v1696_v24 = vld [vmem:[%s2277_s3 + $0x198] sm:$0xff]  }
 0x122   :  { %v664_v35 = vmul.f32 %v656_v48, %v2106_v53  ;;  %v666_v50 = vmul.f32 %v658_v12, %v2108_v1  ;;  %v663_v51 = vmul.f32 %v655_v22, %v2110_v41  ;;  %v670_v52 = vmul.f32 %v662_v7, %v2104_v15 }
 0x123   :  { %v665_v54 = vmul.f32 %v657_v47, %v2112_v2  ;;  %v668_v56 = vmul.f32 %v660_v49, %v2114_v44  ;;  %v667_v20 = vmul.f32 %v659_v62, %v2150_v55  ;;  %v669_v45 = vmul.f32 %v661_v40, %v2152_v26  ;;  %v1699_v40 = vld [vmem:[%s2277_s3 + $0x110] sm:$0xff]  }
 0x124   :  { %v672_v57 = vmul.f32 0.044715, %v664_v35  ;;  %v674_v9 = vmul.f32 0.044715, %v666_v50  ;;  %v671_v13 = vmul.f32 0.044715, %v663_v51 }
 0x125   :  { %v673_v60 = vmul.f32 0.044715, %v665_v54  ;;  %v676_v61 = vmul.f32 0.044715, %v668_v56  ;;  %v678_v63 = vmul.f32 0.044715, %v670_v52 }
 0x126   :  { %v680_v3 = vadd.f32 %v672_v57, %v2106_v53  ;;  %v682_v6 = vadd.f32 %v674_v9, %v2108_v1  ;;  %v679_v17 = vadd.f32 %v671_v13, %v2110_v41  ;;  %v675_v31 = vmul.f32 0.044715, %v667_v20  ;;  %v1700_v20 = vld [vmem:[%s2277_s3 + $0x190] sm:$0xff]  }
 0x127   :  { %v681_v14 = vadd.f32 %v673_v60, %v2112_v2  ;;  %v684_v37 = vadd.f32 %v676_v61, %v2114_v44  ;;  %v686_v16 = vadd.f32 %v678_v63, %v2104_v15  ;;  %v677_v30 = vmul.f32 0.044715, %v669_v45  ;;  %v1701_v45 = vld [vmem:[%s2277_s3 + $0x148] sm:$0xff]  }
 0x128   :  { %v688_v18 = vmul.f32 0.7978846, %v680_v3  ;;  %v690_v19 = vmul.f32 0.7978846, %v682_v6  ;;  %v687_v21 = vmul.f32 0.7978846, %v679_v17  ;;  %v683_v12 = vadd.f32 %v675_v31, %v2150_v55 }
 0x129   :  { %v689_v59 = vmul.f32 0.7978846, %v681_v14  ;;  %v692_v58 = vmul.f32 0.7978846, %v684_v37  ;;  %v694_v5 = vmul.f32 0.7978846, %v686_v16  ;;  %v685_v35 = vadd.f32 %v677_v30, %v2152_v26 }
 0x12a   :  { %1725 = vtanh.f32 %v688_v18  ;;  %v691_v60 = vmul.f32 0.7978846, %v683_v12  ;;  %v1682_v3 = vld [vmem:[%s2277_s3 + $0x1f0] sm:$0xff]   ;;  %v1685_v17 = vld [vmem:[%s2277_s3 + $0x168] sm:$0xff]   ;;  %v1689_v16 = vld [vmem:[%s2277_s3 + $0x160] sm:$0xff]  }
 0x12b   :  { %1727 = vtanh.f32 %v690_v19  ;;  %v693_v63 = vmul.f32 0.7978846, %v685_v35  ;;  %v1687_v14 = vld [vmem:[%s2277_s3 + $0x128] sm:$0xff]   ;;  %v1690_v18 = vld [vmem:[%s2277_s3 + $0x1e0] sm:$0xff]  }
 0x12c   :  { %1729 = vtanh.f32 %v687_v21  ;;  %v1688_v37 = vld [vmem:[%s2277_s3 + $0x1a8] sm:$0xff]   ;;  %v1691_v19 = vld [vmem:[%s2277_s3 + $0x120] sm:$0xff]  }
 0x12d   :  { %1731 = vtanh.f32 %v689_v59  ;;  %v1692_v21 = vld [vmem:[%s2277_s3 + $0x1a0] sm:$0xff]   ;;  %v1694_v59 = vld [vmem:[%s2277_s3 + $0x1d8] sm:$0xff]   ;;  %v1703_v31 = vld [vmem:[%s2277_s3 + $0x108] sm:$0xff]  }
 0x12e   :  { %1733 = vtanh.f32 %v692_v58  ;;  %v1697_v58 = vld [vmem:[%s2277_s3 + $0x150] sm:$0xff]  }
 0x12f   :  { %1735 = vtanh.f32 %v694_v5  ;;  %v1698_v5 = vld [vmem:[%s2277_s3 + $0x1d0] sm:$0xff]  }
 0x130   :  { %1737 = vtanh.f32 %v691_v60 }
 0x131   :  { %1739 = vtanh.f32 %v693_v63 }
 0x137   :  { %v1726_v33 = vpop.eup %1725 }
 0x138   :  { %v1728_v27 = vpop.eup %1727  ;;  %v704_v28 = vadd.f32 1.0, %v1726_v33 }
 0x139   :  { %v1730_v34 = vpop.eup %1729  ;;  %v706_v29 = vadd.f32 1.0, %v1728_v27  ;;  %v1702_v27 = vld [vmem:[%s2277_s3 + $0x1c8] sm:$0xff]  }
 0x13a   :  { %v1732_v38 = vpop.eup %1731  ;;  %v712_v32 = vmul.f32 0.5, %v704_v28  ;;  %v703_v39 = vadd.f32 1.0, %v1730_v34  ;;  %v1704_v34 = vld [vmem:[%s2277_s3 + $0x188] sm:$0xff]  }
 0x13b   :  { %v1734_v36 = vpop.eup %1733  ;;  %v714_v42 = vmul.f32 0.5, %v706_v29  ;;  %v705_v43 = vadd.f32 1.0, %v1732_v38  ;;  %v1705_v29 = vld [vmem:[%s2277_s3 + $0x140] sm:$0xff]  }
 0x13c   :  { %v1736_v4 = vpop.eup %1735  ;;  %v720_v10 = vmul.f32 %v712_v32, %v2106_v53  ;;  %v711_v7 = vmul.f32 0.5, %v703_v39  ;;  %v708_v48 = vadd.f32 1.0, %v1734_v36  ;;  %v1679_v53 = vld [vmem:[%s2277_s3 + $0x138] sm:$0xff]   ;;  %v1706_v38 = vld [vmem:[%s2277_s3 + $0x1c0] sm:$0xff]  }
 0x13d   :  { %v722_v22 = vmul.f32 %v714_v42, %v2108_v1  ;;  %v713_v47 = vmul.f32 0.5, %v705_v43  ;;  %v710_v49 = vadd.f32 1.0, %v1736_v4  ;;  %v1680_v1 = vld [vmem:[%s2277_s3 + $0x1b8] sm:$0xff]   ;;  %v1738_v25 = vpop.eup %1737  ;;  %v1707_v39 = vld [vmem:[%s2277_s3 + $0x100] sm:$0xff]  }
 0x13e   :  { %v728_v50 = vpack.c.bf16 %v720_v10, %v720_v10  ;;  %v719_v51 = vmul.f32 %v711_v7, %v2110_v41  ;;  %v716_v52 = vmul.f32 0.5, %v708_v48  ;;  %v1740_v62 = vpop.eup %1739  ;;  %v707_v33 = vadd.f32 1.0, %v1738_v25  ;;  %v1708_v36 = vld [vmem:[%s2277_s3 + $0x180] sm:$0xff]  }
 0x13f   :  { %v730_v54 = vpack.c.bf16 %v722_v22, %v722_v22  ;;  %v721_v56 = vmul.f32 %v713_v47, %v2112_v2  ;;  %v718_v57 = vmul.f32 0.5, %v710_v49  ;;  %v1681_v2 = vld [vmem:[%s2277_s3 + $0x170] sm:$0xff]   ;;  %v709_v28 = vadd.f32 1.0, %v1740_v62  ;;  %v1407_v62 = vld [vmem:[%s2278_s4] sm:$0x1] }
 0x140   :  { %1279 = vmatprep.mubr.bf16.mxu0 %v728_v50  ;;  %v727_v9 = vpack.c.bf16 %v719_v51, %v719_v51  ;;  %v724_v13 = vmul.f32 %v716_v52, %v2114_v44  ;;  %v1683_v44 = vld [vmem:[%s2277_s3 + $0x130] sm:$0xff]   ;;  %v715_v30 = vmul.f32 0.5, %v707_v33 }
 0x141   :  { %1319 = vmatprep.mubr.bf16.mxu1 %v730_v54  ;;  %v729_v41 = vpack.c.bf16 %v721_v56, %v721_v56  ;;  %v726_v61 = vmul.f32 %v718_v57, %v2104_v15  ;;  %v1684_v15 = vld [vmem:[%s2277_s3 + $0x1b0] sm:$0xff]   ;;  %v717_v32 = vmul.f32 0.5, %v709_v28 }
 0x142   :  { %1280 = vmatmul.mubr.bf16.vlgmr.msra.gmra.mxu0 %v727_v9  ;;  %v732_v0 = vpack.c.bf16 %v724_v13, %v724_v13  ;;  %v723_v42 = vmul.f32 %v715_v30, %v2150_v55 }
 0x143   :  { %1320 = vmatmul.mubr.bf16.vlgmr.msra.gmra.mxu1 %v729_v41  ;;  %1599 = vmatpush3.bf16.msra.mxu0 %v1679_v53  ;;  %v734_v6 = vpack.c.bf16 %v726_v61, %v726_v61  ;;  %v725_v43 = vmul.f32 %v717_v32, %v2152_v26 }
 0x144   :  { %1621 = vmatpush3.bf16.msra.mxu1 %v1680_v1  ;;  %1359 = vmatprep.mubr.bf16.mxu0 %v732_v0  ;;  %v731_v4 = vpack.c.bf16 %v723_v42, %v723_v42 }
 0x145   :  { %1399 = vmatprep.mubr.bf16.mxu1 %v734_v6  ;;  %1600 = vmatprep.subr.bf16.mxu0 %v1681_v2  ;;  %v733_v10 = vpack.c.bf16 %v725_v43, %v725_v43 }
 0x146   :  { %1622 = vmatprep.subr.bf16.mxu1 %v1682_v3 }
 0x147   :  { %1601 = vmatpush3.bf16.msra.mxu0 %v1683_v44 }
 0x148   :  { %1623 = vmatpush3.bf16.msra.mxu1 %v1684_v15  ;;  %1602 = vmatprep.subr.bf16.mxu0 %v1685_v17 }
 0x149   :  { %1624 = vmatprep.subr.bf16.mxu1 %v1686_v8 }
 0x14b   :  { %1603 = vmatpush3.bf16.msra.mxu0 %v1687_v14 }
 0x14c   :  { %1625 = vmatpush3.bf16.msra.mxu1 %v1688_v37  ;;  %1604 = vmatprep.subr.bf16.mxu0 %v1689_v16 }
 0x14d   :  { %1626 = vmatprep.subr.bf16.mxu1 %v1690_v18 }
 0x14f   :  { %1605 = vmatpush3.bf16.msra.mxu0 %v1691_v19 }
 0x150   :  { %1627 = vmatpush3.bf16.msra.mxu1 %v1692_v21  ;;  %1606 = vmatprep.subr.bf16.mxu0 %v1693_v46 }
 0x151   :  { %1628 = vmatprep.subr.bf16.mxu1 %v1694_v59 }
 0x153   :  { %1607 = vmatpush3.bf16.msra.mxu0 %v1695_v23 }
 0x154   :  { %1629 = vmatpush3.bf16.msra.mxu1 %v1696_v24  ;;  %1608 = vmatprep.subr.bf16.mxu0 %v1697_v58 }
 0x155   :  { %1630 = vmatprep.subr.bf16.mxu1 %v1698_v5 }
 0x157   :  { %1609 = vmatpush3.bf16.msra.mxu0 %v1699_v40 }
 0x158   :  { %1631 = vmatpush3.bf16.msra.mxu1 %v1700_v20  ;;  %1610 = vmatprep.subr.bf16.mxu0 %v1701_v45  ;;  %v1408_v45 = vld [vmem:[%s2278_s4 + $0x1] sm:$0x1]  ;;  %s1745_s4 = scalar_lea.vmem %s1462_s25, 128 }
 0x159   :  { %1632 = vmatprep.subr.bf16.mxu1 %v1702_v27  ;;  %p1746_p0 = scmp.ne.s32.totalorder %s1462_s25, %s1745_s4  ;;  %p1751_p2 = scmp.lt.s32.totalorder %s1745_s4, %s1745_s4 }
 0x15b   :  { %1611 = vmatpush3.bf16.msra.mxu0 %v1703_v31  ;;  %p1752_p3 = por %p1751_p2, %p1750_p1 }
 0x15c   :  { %1633 = vmatpush3.bf16.msra.mxu1 %v1704_v34  ;;  %1612 = vmatprep.subr.bf16.mxu0 %v1705_v29 }
 0x15d   :  { %1634 = vmatprep.subr.bf16.mxu1 %v1706_v38  ;;  %p1753_p4 = pnand %p1752_p3, %p1746_p0 }
 0x15f   :  { %1613 = vmatpush3.bf16.msra.mxu0 %v1707_v39 }
 0x160   :  { %1635 = vmatpush3.bf16.msra.mxu1 %v1708_v36 }
 0x162   :  { %1360 = vmatmul.mubr.bf16.vlgmr.msra.gmra.mxu0 %v731_v4 }
 0x163   :  { %1400 = vmatmul.mubr.bf16.vlgmr.msra.gmra.mxu1 %v733_v10 }
 0x202   :  { %v1570_v7 = vpop.f32.mrf.mxu0 }
 0x203   :  { %v1592_v48 = vpop.f32.mrf.mxu1 }
 0x204   :  { %v1571_v12 = vpop.f32.mrf.mxu0 }
 0x205   :  { %v1593_v22 = vpop.f32.mrf.mxu1  ;;  %v1572_v51 = vadd.f32 %v1571_v12, %v1570_v7 }
 0x206   :  { %v1573_v47 = vpop.f32.mrf.mxu0  ;;  %v1594_v52 = vadd.f32 %v1593_v22, %v1592_v48 }
 0x207   :  { %v1595_v49 = vpop.f32.mrf.mxu1 }
 0x208   :  { %v1574_v35 = vpop.f32.mrf.mxu0  ;;  %v1322_v26 = vadd.f32 %v1594_v52, %v1572_v51 }
 0x209   :  { %v1596_v50 = vpop.f32.mrf.mxu1 }
 0x222   :  { %v1614_v55 = vpop.f32.mrf.mxu0 }
 0x223   :  { %v1636_v54 = vpop.f32.mrf.mxu1 }
 0x224   :  { %v1615_v56 = vpop.f32.mrf.mxu0 }
 0x225   :  { %v1616_v53 = vadd.f32 %v1615_v56, %v1614_v55  ;;  %v1637_v57 = vpop.f32.mrf.mxu1 }
 0x226   :  { %v1617_v9 = vpop.f32.mrf.mxu0  ;;  %v1638_v13 = vadd.f32 %v1637_v57, %v1636_v54 }
 0x227   :  { %v1362_v1 = vadd.f32 %v1616_v53, %v1322_v26  ;;  %v1639_v60 = vpop.f32.mrf.mxu1 }
 0x228   :  { %v1618_v41 = vpop.f32.mrf.mxu0 }
 0x229   :  { %v1402_v61 = vadd.f32 %v1638_v13, %v1362_v1  ;;  %v1640_v2 = vpop.f32.mrf.mxu1 }
 0x22b   :  { %v1417_v63 = vmul.f32 %v1402_v61, %v1402_v61  ;;  %v1410_v0 = vsel %vm1409_vm1, %v1402_v61, 0.0 }
 0x22c   :  { %v1411_v3 = vrot.slane %v1410_v0, 4 }
 0x22d   :  { %v1418_v6 = vsel %vm1409_vm1, %v1417_v63, 0.0 }
 0x22e   :  { %v1412_v44 = vadd.f32 %v1411_v3, %v1410_v0  ;;  %v1419_v15 = vrot.slane %v1418_v6, 4 }
 0x230   :  { %v1413_v17 = vrot.slane %v1412_v44, 2  ;;  %v1420_v8 = vadd.f32 %v1419_v15, %v1418_v6 }
 0x232   :  { %v1414_v14 = vadd.f32 %v1413_v17, %v1412_v44  ;;  %v1421_v37 = vrot.slane %v1420_v8, 2 }
 0x234   :  { %v1415_v16 = vrot.slane %v1414_v14, 1  ;;  %v1422_v18 = vadd.f32 %v1421_v37, %v1420_v8 }
 0x236   :  { %v1416_v19 = vadd.f32 %v1415_v16, %v1414_v14  ;;  %v1423_v21 = vrot.slane %v1422_v18, 1 }
 0x238   :  { %v1424_v46 = vadd.f32 %v1423_v21, %v1422_v18  ;;  %v1425_v59 = vmul.f32 0.125, %v1416_v19 }
 0x23a   :  { %v1426_v23 = vmul.f32 0.125, %v1424_v46  ;;  %v1427_v24 = vmul.f32 %v1425_v59, %v1425_v59 }
 0x23c   :  { %v1428_v58 = vsub.f32 %v1426_v23, %v1427_v24 }
 0x23e   :  { %v1429_v25 = vmax.f32 %v1428_v58, 0.0 }
 0x240   :  { %v1430_v5 = vadd.f32 1e-05, %v1429_v25 }
 0x242   :  { %1741 = vrsqrt.f32 %v1430_v5 }
 0x24f   :  { %v1742_v40 = vpop.eup %1741 }
 0x250   :  { %v1432_v20 = vmul.f32 %v1742_v40, %v1407_v62 }
 0x252   :  { %v1433_v33 = vmul.f32 %v1432_v20, %v1425_v59  ;;  %v1438_v27 = vrot.slane %v1432_v20, %v2045_v11 }
 0x254   :  { %v1434_v28 = vsub.f32 %v1408_v45, %v1433_v33  ;;  %v1439_v31 = vmul.f32 %v1438_v27, %v1402_v61 }
 0x256   :  { %v1443_v34 = vrot.slane %v1434_v28, %v2045_v11 }
 0x258   :  { %v1444_v29 = vadd.f32 %v1443_v34, %v1439_v31 }
 0x25a   :  { %v1445_v30 = vmul.f32 %v1444_v29, %v1444_v29 }
 0x25c   :  { %v1446_v38 = vmul.f32 %v1445_v30, %v1444_v29 }
 0x25e   :  { %v1447_v32 = vmul.f32 0.044715, %v1446_v38 }
 0x260   :  { %v1448_v39 = vadd.f32 %v1447_v32, %v1444_v29 }
 0x262   :  { %v1449_v36 = vmul.f32 0.7978846, %v1448_v39 }
 0x264   :  { %1743 = vtanh.f32 %v1449_v36 }
 0x271   :  { %v1744_v42 = vpop.eup %1743 }
 0x272   :  { %v1451_v43 = vadd.f32 1.0, %v1744_v42 }
 0x274   :  { %v1452_v4 = vmul.f32 0.5, %v1451_v43 }
 0x276   :  { %v1453_v10 = vmul.f32 %v1452_v4, %v1444_v29 }
 0x278   :  { %1454 = vst.msk [vmem:[#allocation2] sm:$0xff] %vm1409_vm1, %v1453_v10 }
 0x279   :  { %1756 = shalt.err (!%p1753_p4)
}
 0x27a   :  { %1464 = dma.vmem_to_hbm [thread:$0]  %s1462_s25, 128, %s2279_s5, [#allocation3]  }
 0x27b   :  { %1765 = dma.done.wait [#allocation3], 128  }
 0x27c   :  { %1766 = vsyncadd [#allocation3], 4294967168 }
 0x27d   :  { %1468 = vsyncpa [#allocation3], 1 }

</bundles_post_ra>
